<compile_context>
chip_gen: v5e
topology: v5e:2x2
jax: 0.10.0
libtpu: 0.0.40
codegen_flags: <defaults>
</compile_context>

<pallas_src>
import functools
import itertools

import jax
import jax.numpy as jnp
from jax import lax
from jax.experimental import pallas as pl
from jax.experimental.pallas import tpu as pltpu

_LANE = 128
_SUB = 16  # bf16 sublane packing: 16 rows per vreg


def _round_up(x, m):
    return ((x + m - 1) // m) * m


def _tpu_caps():
    """(vmem_capacity_bytes, epilogue_dtype) for the local TPU generation."""
    kind = ""
    try:
        kind = jax.devices()[0].device_kind.lower()
    except Exception:
        pass
    vmem_cap = 64 << 20  # conservative default (v7x has 64 MiB per TensorCore)
    try:
        vmem_cap = int(getattr(pltpu.get_tpu_info(), "vmem_capacity_bytes", vmem_cap))
    except Exception:
        pass
    # v4/v5e/v5p VPU+EUP have no bf16 path -> keep the epilogue in f32 there.
    bf16_vpu = kind and ("v4" not in kind) and ("v5" not in kind)
    ep_dtype = jnp.bfloat16 if bf16_vpu else jnp.float32
    return vmem_cap, ep_dtype


def _gated_conv_kernel(x_ref, w_ref, o_ref, *, m0, gate_shift, ep_dtype):
    # x_ref: (tile_p, Kc_pad) bf16     w_ref: (Kc_pad, W_pack) bf16 (VMEM resident)
    # o_ref: (tile_p, W_pack) bf16
    # One MXU matmul folds all 27 conv taps (contraction = 27*C_in, lane padded).
    y32 = jnp.dot(x_ref[...], w_ref[...], preferred_element_type=jnp.float32)
    # Gate pre-activations were packed 3*m1 lanes to the right of their vector
    # components; a single lane rotate (XLU slot) aligns each gate under its
    # component.  Pad lanes are exactly zero, and rotated garbage only lands on
    # lanes that are relu'd (scalars) or sliced off by the wrapper.
    g32 = pltpu.roll(y32, shift=gate_shift, axis=1) if gate_shift else y32
    y = y32.astype(ep_dtype)
    g = g32.astype(ep_dtype)
    chan = lax.broadcasted_iota(jnp.int32, (1, y.shape[-1]), 1)  # (1, W) lane mask
    out = jnp.where(chan < m0, jax.nn.relu(y), y * jax.nn.sigmoid(g))
    o_ref[...] = out.astype(o_ref.dtype)


def nonlinearity_block_gated(x_ncdhw, weight, m0, m1, *, tile_p=None,
                             compute_dtype=jnp.bfloat16):
    """GatedBlock forward: 3x3x3 'same' conv (no bias) + gated nonlinearity.

    features_out = (m0, m1): the conv emits m0 scalar channels, 3*m1 l=1 vector
    components and m1 gate channels; scalars get relu, each vector component is
    scaled by sigmoid(its capsule's gate).

    x: (N, C_in, D, H, W); weight: (m0 + 4*m1, C_in, 3, 3, 3).

    NOTE: matmul operands are cast to `compute_dtype` (bf16 by default, f32 MXU
    accumulation).  With genuine f32 inputs this diverges from an f32 conv at the
    bf16 rounding level; pass compute_dtype=jnp.float32 if that matters.
    """
    N, C_in, D, H, W = x_ncdhw.shape
    Cc = weight.shape[0]
    assert Cc == m0 + 4 * m1, "conv must emit m0 scalars + 3*m1 vector comps + m1 gates"
    C_out = m0 + 3 * m1
    P = N * D * H * W
    Kc = 27 * C_in
    Kc_pad = _round_up(Kc, _LANE)
    # Single packed matmul width: [m0 scalars | 3*m1 vector comps | 3*m1 replicated
    # gate lanes | zero pad] -- half the width of a separate feat/gate split.
    W_pack = _round_up(max(m0 + 6 * m1, 1), _LANE)

    in_bytes = jnp.dtype(compute_dtype).itemsize
    out_bytes = in_bytes                       # kernel writes compute_dtype
    vmem_cap, ep_dtype = _tpu_caps()
    # Generation-aware VMEM budget: <= 48 MiB on 64 MiB (v7x) parts, up to 96 MiB on
    # 128 MiB (v5e/v6e) parts; never one shared hard-coded limit across generations.
    vmem_budget = min(int(vmem_cap) * 3 // 4, 96 << 20)

    w_bytes = Kc_pad * W_pack * in_bytes
    if tile_p is None:
        # Per-row cost: double-buffered x/out tiles + f32 matmul/roll temporaries.
        per_row = 2 * Kc_pad * in_bytes + 2 * W_pack * out_bytes + 3 * W_pack * 4
        budget = max(vmem_budget - 2 * w_bytes - (4 << 20), 1 << 20)
        tile_p = max(_SUB, min(budget // per_row, 4096))
        # Keep >= ~8 grid steps so the 'parallel' axis shards across v7x's two
        # TensorCores and the DMA pipeline has iterations to overlap.
        tile_p = min(tile_p, _round_up(pl.cdiv(P, 8), _SUB))
        tile_p = max(_SUB, (tile_p // _SUB) * _SUB)
    assert tile_p % _SUB == 0, "bf16 blocks want 16-row (sublane-packed) tiles"

    # ---- glue: bf16 first, 27 taps folded into the contraction dim, exactly one
    # HBM materialization (lane padding folded into the concat, no row-pad copy).
    # TODO(synk): halo-tiled in-kernel tap gathering (no HBM im2col) not implemented.
    x = jnp.transpose(x_ncdhw, (0, 2, 3, 4, 1)).astype(compute_dtype)   # (N,D,H,W,C)
    xp = jnp.pad(x, ((0, 0), (1, 1), (1, 1), (1, 1), (0, 0)))
    taps = list(itertools.product(range(3), repeat=3))
    cols = [xp[:, kd:kd + D, kh:kh + H, kw:kw + W, :].reshape(P, C_in)
            for kd, kh, kw in taps]
    if Kc_pad > Kc:
        cols.append(jnp.zeros((P, Kc_pad - Kc), compute_dtype))
    x_col = jnp.concatenate(cols, axis=1)                               # (P, Kc_pad)

    # Weight folded the same way: rows tap-major, cols = packed output channels.
    w_col = jnp.concatenate(
        [weight[:, :, kd, kh, kw].astype(jnp.float32).T for kd, kh, kw in taps],
        axis=0)                                                         # (Kc, Cc)
    w_packed = jnp.zeros((Kc_pad, W_pack), jnp.float32)
    w_packed = w_packed.at[:Kc, :C_out].set(w_col[:, :C_out])
    if m1:
        # Gate column of capsule i replicated 3x so each vector component has its
        # own gate lane, placed 3*m1 lanes right of the components it gates.
        gate_rep = jnp.repeat(w_col[:, C_out:C_out + m1], 3, axis=1)    # (Kc, 3*m1)
        w_packed = w_packed.at[:Kc, C_out:C_out + 3 * m1].set(gate_rep)
    w_packed = w_packed.astype(compute_dtype)
    gate_shift = (W_pack - 3 * m1) % W_pack if m1 else 0

    grid = (pl.cdiv(P, tile_p),)
    vmem_need = (2 * tile_p * Kc_pad * in_bytes      # double-buffered x tiles
                 + 2 * tile_p * W_pack * out_bytes   # double-buffered out tiles
                 + 2 * w_bytes                       # resident weight (double-buffered)
                 + 3 * tile_p * W_pack * 4           # f32 matmul/roll temporaries
                 + (2 << 20))                        # headroom
    vmem_limit = max(min(int(vmem_need), vmem_budget), 16 << 20)

    cost = pl.CostEstimate(
        flops=2 * P * Kc_pad * W_pack,
        transcendentals=P * W_pack,
        bytes_accessed=(P * Kc_pad * in_bytes + w_bytes + P * W_pack * out_bytes),
    )

    out = pl.pallas_call(
        functools.partial(_gated_conv_kernel, m0=m0, gate_shift=gate_shift,
                          ep_dtype=ep_dtype),
        out_shape=jax.ShapeDtypeStruct((P, W_pack), compute_dtype),
        grid_spec=pltpu.PrefetchScalarGridSpec(
            num_scalar_prefetch=0,
            grid=grid,
            in_specs=[
                pl.BlockSpec((tile_p, Kc_pad), lambda i: (i, 0)),
                # Constant index_map -> weight stays resident in VMEM (one DMA).
                # (pl.Buffered(1) could drop its second buffer; left at default.)
                pl.BlockSpec((Kc_pad, W_pack), lambda i: (0, 0)),
            ],
            out_specs=pl.BlockSpec((tile_p, W_pack), lambda i: (i, 0)),
        ),
        compiler_params=pltpu.CompilerParams(
            dimension_semantics=("parallel",),
            vmem_limit_bytes=vmem_limit,
        ),
        cost_estimate=cost,
    )(x_col, w_packed)

    out = out[:, :C_out].astype(x_ncdhw.dtype).reshape(N, D, H, W, C_out)
    return jnp.transpose(out, (0, 4, 1, 2, 3))                          # back to NCDHW


def _reference(x, weight, m0, m1):
    y = lax.conv_general_dilated(
        x, weight, window_strides=(1, 1, 1), padding=[(1, 1)] * 3,
        dimension_numbers=('NCDHW', 'OIDHW', 'NCDHW'))
    scal = jax.nn.relu(y[:, :m0])
    vec = y[:, m0:m0 + 3 * m1]
    gates = jnp.repeat(jax.nn.sigmoid(y[:, m0 + 3 * m1:]), 3, axis=1)
    return jnp.concatenate([scal, vec * gates], axis=1)


if __name__ == "__main__":
    key = jax.random.PRNGKey(0)
    # features_in = (2, 2): 2 scalar + 2 l=1 capsules -> C_in = 2 + 3*2 = 8
    # features_out = (2, 2): conv emits 2 scalars + 6 vector comps + 2 gates = 10 chans
    m0, m1 = 2, 2
    c_in = 2 + 3 * 2
    cc = m0 + 3 * m1 + m1
    N, D, H, W = 2, 7, 8, 8          # P = 896 -> multi-step parallel grid

    kx, kw = jax.random.split(key)
    x = jax.random.normal(kx, (N, c_in, D, H, W), jnp.float32)
    weight = 0.1 * jax.random.normal(kw, (cc, c_in, 3, 3, 3), jnp.float32)
    # Pre-round to bf16 so the kernel's bf16 MXU path (exact bf16 products, f32
    # accumulation) matches the f32 XLA reference up to epilogue/output rounding.
    x = x.astype(jnp.bfloat16).astype(jnp.float32)
    weight = weight.astype(jnp.bfloat16).astype(jnp.float32)

    out = nonlinearity_block_gated(x, weight, m0, m1)
    jax.block_until_ready(out)

    ref = _reference(x, weight, m0, m1)
    assert out.shape == (N, m0 + 3 * m1, D, H, W)
    err = float(jnp.max(jnp.abs(out.astype(jnp.float32) - ref)))
    # Tolerance covers bf16 epilogue (sigmoid/mul) and bf16 output rounding at
    # pre-activation magnitudes of O(5); real packing/tap bugs give O(1) errors.
    assert jnp.allclose(out.astype(jnp.float32), ref, atol=8e-2, rtol=3e-2), err
    print("KERNEL_OK")
</pallas_src>

<mosaic_0001>
module attributes {stable_mosaic.version = 11 : i64} {
  func.func @_gated_conv_kernel(%arg0: i32, %arg1: memref<112x256xbf16, #tpu.memory_space<vmem>>, %arg2: memref<256x128xbf16, #tpu.memory_space<vmem>>, %arg3: memref<112x128xbf16, #tpu.memory_space<vmem>>) attributes {dimension_semantics = [#tpu.dimension_semantics<parallel>], iteration_bounds = array<i64: 8>, scalar_prefetch = 0 : i64, scratch_operands = 0 : i64, tpu.core_type = #tpu.core_type<tc>, window_params = [{transform_indices = @transform_0, window_bounds = array<i64: 112, 256>}, {pipeline_mode = #tpu.pipeline_mode<synchronous>, transform_indices = @transform_1, window_bounds = array<i64: 256, 128>}, {transform_indices = @transform_2, window_bounds = array<i64: 112, 128>}]} {
    %c0 = arith.constant 0 : index
    %c0_0 = arith.constant 0 : index
    %0 = vector.load %arg1[%c0, %c0_0] : memref<112x256xbf16, #tpu.memory_space<vmem>>, vector<112x256xbf16>
    %c0_1 = arith.constant 0 : index
    %c0_2 = arith.constant 0 : index
    %1 = vector.load %arg2[%c0_1, %c0_2] : memref<256x128xbf16, #tpu.memory_space<vmem>>, vector<256x128xbf16>
    %cst = arith.constant dense<0.000000e+00> : vector<112x128xf32>
    %2 = tpu.matmul %0, %1, %cst {dimension_numbers = #tpu.dot_dimension_numbers<[1], [0], [0], [1], [0, 0, 1, 1], [], []>} : vector<112x256xbf16>, vector<256x128xbf16>, vector<112x128xf32> -> vector<112x128xf32>
    %c122_i32 = arith.constant 122 : i32
    %3 = tpu.dynamic_rotate %2 by %c122_i32 dim 1 : vector<112x128xf32>, i32 -> vector<112x128xf32>
    %4 = arith.truncf %2 : vector<112x128xf32> to vector<112x128xbf16>
    %5 = arith.truncf %3 : vector<112x128xf32> to vector<112x128xbf16>
    %6 = tpu.iota {dimensions = array<i32: 1>} : vector<1x128xi32>
    %c2_i32 = arith.constant 2 : i32
    %7 = vector.broadcast %c2_i32 : i32 to vector<1x128xi32>
    %8 = arith.cmpi slt, %6, %7 : vector<1x128xi32>
    %cst_3 = arith.constant 0.000000e+00 : bf16
    %9 = vector.broadcast %cst_3 : bf16 to vector<112x128xbf16>
    %10 = arith.maximumf %4, %9 : vector<112x128xbf16>
    %11 = arith.negf %5 : vector<112x128xbf16>
    %12 = math.exp %11 : vector<112x128xbf16>
    %cst_4 = arith.constant 1.000000e+00 : bf16
    %13 = vector.broadcast %cst_4 : bf16 to vector<112x128xbf16>
    %14 = arith.addf %13, %12 : vector<112x128xbf16>
    %15 = arith.divf %13, %14 : vector<112x128xbf16>
    %16 = arith.mulf %4, %15 : vector<112x128xbf16>
    %17 = vector.shape_cast %8 : vector<1x128xi1> to vector<1x128xi1>
    %18 = vector.broadcast %17 : vector<1x128xi1> to vector<112x128xi1>
    %19 = arith.select %18, %10, %16 : vector<112x128xi1>, vector<112x128xbf16>
    %c0_5 = arith.constant 0 : index
    %c0_6 = arith.constant 0 : index
    %20 = vector.load %arg3[%c0_5, %c0_6] : memref<112x128xbf16, #tpu.memory_space<vmem>>, vector<112x128xbf16>
    tpu.vector_store %arg3[%c0_5, %c0_6], %19 {strides = array<i32>} : memref<112x128xbf16, #tpu.memory_space<vmem>>, vector<112x128xbf16>,
    return
  }
  func.func @transform_0(%arg0: i32) -> (i32, i32) {
    %c0_i32 = arith.constant 0 : i32
    %c0_i32_0 = arith.constant 0 : i32
    return %arg0, %c0_i32 : i32, i32
  }
  func.func @transform_1(%arg0: i32) -> (i32, i32) {
    %c0_i32 = arith.constant 0 : i32
    %c0_i32_0 = arith.constant 0 : i32
    %c0_i32_1 = arith.constant 0 : i32
    return %c0_i32, %c0_i32_0 : i32, i32
  }
  func.func @transform_2(%arg0: i32) -> (i32, i32) {
    %c0_i32 = arith.constant 0 : i32
    %c0_i32_0 = arith.constant 0 : i32
    return %arg0, %c0_i32 : i32, i32
  }
}

</mosaic_0001>

<bundles_post_ra>
// kernel: tpu_custom_call.1
= control target key start
LH: loop header
LB: loop body
LE: loop exit
PB: predicated region body
PF: predicated region fallthrough
CT: control target
= control target key end

     0   :  { %7 = vsyncpa [#allocation3], 0  ;;  %s1907_s0 = inlined_call_operand.hbm [shape: bf16[896,256], index: 0, kind: input, shape index: {}]   ;;  %s1908_s1 = inlined_call_operand.hbm [shape: bf16[256,128], index: 1, kind: input, shape index: {}]   ;;  %s1909_s2 = inlined_call_operand.hbm [shape: bf16[896,128], index: 2, kind: output, shape index: {}]  }
   0x1   :  { %9 = vsyncpa [#allocation3 + $0x1], 0 }
   0x2   :  { %10 = vsyncpa [#allocation6], 0 }
   0x3   :  { %11 = vsyncpa [#allocation4], 0 }
   0x4   :  { %13 = vsyncpa [#allocation4 + $0x1], 0  ;;  %s1535_s9 = smov 0   ;;  %s1537_s10 = smov 0  }
   0x5   :  { %s1539_s11 = smov 0   ;;  %s1541_s12 = smov 0  }
   0x6 LB: > { %s1556_s13 = sadd.s32 4294967295, %s1509_s12   ;;  %s970_s14 = sadd.s32 4294967294, %s1509_s12   ;;  %s1509_s12 = sphi %s1541_s12, %s1920_s12   ;;  %s1505_s11 = sphi %s1539_s11, %s1919_s11   ;;  %s1501_s10 = sphi %s1537_s10, %s1918_s10   ;;  %s1497_s9 = sphi %s1535_s9, %s1917_s9  }
   0x7   : > { %p39_p0 = scmp.ne.s32.totalorder %s1501_s10, %s1497_s9  ;;  %p40_p1 = scmp.eq.s32.totalorder %s1556_s13, 0 }
   0x8   : > { %p84_p2 = scmp.eq.s32.totalorder %s1556_s13, 7  ;;  %p90_p3 = scmp.eq.s32.totalorder %s970_s14, 7 }
   0x9   : > { %p1565_p4 = por %p40_p1, %p39_p0  ;;  %p971_p5 = scmp.ge.s32.totalorder %s1509_s12, 1 }
   0xa   : > { %p1570_p6 = por %p90_p3, %p39_p0  ;;  %p97_p7 = scmp.lt.s32.totalorder %s1509_s12, 9 }
   0xb   : > { %s108_s19 = sshll.u32 %s1908_s1, 4  ;;  %s1511_s21 = smov [#allocation5]   ;;  %s109_s19 = int_to_ptr.hbm [resolvable:$true] %s108_s19 }
   0xc   : > { %p1578_p8 = pnand %p971_p5, %p97_p7  ;;  %s110_s22 = sshll.u32 %s1511_s21, 4  ;;  %s111_s22 = int_to_ptr.vmem [resolvable:$true] %s110_s22 }
   0xd   : > { %s1587_s23 = sadd.s32 1, %s1509_s12   ;;  %s1512_s24 = smov 64  }
   0xe   : > { %p1203_p9 = pneg %p1578_p8  ;;  %s1513_s25 = smov 4  }
   0xf   : > { %s23_s26 = ssub.s32 %s1509_s12, %s1587_s23  ;;  %s26_s27 = sadd.s32 1, %s1505_s11 }
  0x10   : > { %p1204_p10 = pnand %p1203_p9, %p40_p1  ;;  %p24_p11 = scmp.eq.s32.totalorder %s23_s26, 0 }
  0x11   : > { %p33_p12 = scmp.ne.s32.totalorder %s1505_s11, %s1501_s10  ;;  %p34_p13 = scmp.eq.s32.totalorder %s1509_s12, 0 }
  0x12   : > { %1206 = dma.hbm_to_vmem [thread:$0]  (!%p1204_p10), %s109_s19, 2048, %s111_s22, [#allocation6], %s1512_s24, %s1512_s24, %s1513_s25  }
  0x13   : > { %p1216_p0 = scmp.lt.s32.totalorder %s1509_s12, 8  ;;  %p35_p3 = por %p34_p13, %p33_p12 }
  0x14   : > { %s1597_s28 = scalar_select %p24_p11, %s1505_s11, %s26_s27  }
  0x15   : > { %p1601_p5 = por %p84_p2, %p33_p12  ;;  %s124_s30 = sand.u32 1, %s1505_s11  }
  0x16   : > { %s1169_s3 = smul.u32 112, %s1509_s12  ;;  %p1610_p7 = pnand %p1216_p0, %p35_p3 }
  0x17   : > { %s1192_s4 = smul.u32 112, %s124_s30  ;;  %s125_s19 = scalar_lea.sflag [#allocation3], %s124_s30 }
  0x18   : > { %s134_s7 = scalar_lea.hbm %s1907_s0, %s1169_s3  ;;  %p1413_p9 = pneg %p1610_p7 }
  0x19   : > { %s135_s14 = sshll.u32 %s134_s7, 4  ;;  %s128_s17 = scalar_lea.vmem [#allocation2], %s1192_s4  ;;  %s136_s14 = int_to_ptr.hbm [resolvable:$true] %s135_s14 }
  0x1a   : > { %s137_s18 = sshll.u32 %s128_s17, 4  ;;  %s1409_s21 = sshra.s32 %s136_s14, 4  ;;  %s138_s18 = int_to_ptr.vmem [resolvable:$true] %s137_s18  ;;  %s1410_s21 = int_to_ptr.hbm [resolvable:$true] %s1409_s21 }
  0x1b   : > { %s1411_s22 = scalar_lea.hbm %s1410_s21, 112  ;;  %s1416_s26 = scalar_lea.hbm %s1907_s0, 896 }
  0x1c   : > { %p1412_p2 = scmp.ne.s32.totalorder %s1410_s21, %s1411_s22  ;;  %p1417_p12 = scmp.lt.s32.totalorder %s1410_s21, %s1907_s0 }
  0x1d   : > { %p1418_p13 = scmp.lt.s32.totalorder %s1416_s26, %s1411_s22 }
  0x1e   : > { %p1414_p10 = pnand %p1413_p9, %p1412_p2 }
  0x1f   : > { %p1419_p0 = por %p1418_p13, %p1417_p12 }
  0x20   : > { %p1415_p11 = pneg %p1414_p10 }
  0x22   : > { %p1420_p3 = pnand %p1419_p0, %p1415_p11 }
  0x24   : > { %1423 = shalt.err (!%p1420_p3)
}
  0x25   : > { %s1514_s30 = smov 128   ;;  %s1515_s4 = smov 8  }
  0x26   : > { %1210 = dma.hbm_to_vmem [thread:$0]  (!%p1610_p7), %s136_s14, 1792, %s138_s18, %s125_s19, %s1514_s30, %s1514_s30, %s1515_s4  }
  0x27   : > { %149 = sbr.rel (%p1578_p8) target bundleno = 446 (0x1be), region = 28  ;;  %s1627_s5 = sand.u32 (!%p1578_p8), 1, %s1501_s10  }
  0x28   : > { %s1193_s6 = smul.u32 (!%p1578_p8), 112, %s1627_s5  ;;  %s152_s7 = scalar_lea.sflag (!%p1578_p8), [#allocation3], %s1627_s5 }
  0x2a   : > { %s1631_s17 = scalar_lea.vmem (!%p1578_p8), [#allocation2], %s1193_s6 }
  0x2c   : > { %1484 = dma.done.wait (%p1565_p4), %s152_s7, 1792  }
  0x2d   : > { %1486 = vsyncadd (%p1565_p4), %s152_s7, 4294965504 }
  0x2e   : > { %1488 = dma.done.wait (%p40_p1), [#allocation6], 2048  }
  0x2f   : > { %1490 = vsyncadd (%p40_p1), [#allocation6], 4294965248  ;;  %v1124_v0 = vld [vmem:[#allocation5 + $0x38] sm:$0xff]  ;;  %v1123_v2 = vld [vmem:[#allocation5 + $0x30] sm:$0xff]  ;;  %s1516_s15 = smov 122   ;;  %s1194_s20 = smul.u32 56, %s1627_s5 }
  0x30   : > { %v1132_v1 = vld [vmem:[#allocation5 + $0x78] sm:$0xff]  ;;  %397 = vmatpush.bf16.msra.mxu0 %v1124_v0  ;;  %1176 = vmatpush.bf16.msra.mxu2 %v1124_v0  ;;  %v1131_v3 = vld [vmem:[#allocation5 + $0x70] sm:$0xff]  ;;  %v1122_v4 = vld [vmem:[#allocation5 + $0x28] sm:$0xff]  ;;  %s1133_s14 = smul.u32 56, %s1556_s13  ;;  %s872_s24 = scalar_lea.sflag [#allocation4], %s1627_s5 }
  0x31   : > { %441 = vmatpush.bf16.msra.mxu1 %v1132_v1  ;;  %1184 = vmatpush.bf16.msra.mxu3 %v1132_v1  ;;  %v1130_v5 = vld [vmem:[#allocation5 + $0x68] sm:$0xff]  ;;  %v1121_v6 = vld [vmem:[#allocation5 + $0x20] sm:$0xff]  ;;  %v1120_v8 = vld [vmem:[#allocation5 + $0x18] sm:$0xff]  ;;  %s1806_s8 = scalar_lea.vmem [#allocation7], %s1194_s20  ;;  %s1459_s30 = scalar_lea.hbm %s1909_s2, 448 }
  0x32   : > { %v1129_v7 = vld [vmem:[#allocation5 + $0x60] sm:$0xff]  ;;  %v1128_v9 = vld [vmem:[#allocation5 + $0x58] sm:$0xff]  ;;  %v1119_v10 = vld [vmem:[#allocation5 + $0x10] sm:$0xff]  ;;  %s883_s21 = scalar_lea.hbm %s1909_s2, %s1133_s14  ;;  %s884_s13 = sshll.u32 %s1806_s8, 4  ;;  %s885_s13 = int_to_ptr.vmem [resolvable:$true] %s884_s13 }
  0x33   : > { %v1127_v11 = vld [vmem:[#allocation5 + $0x50] sm:$0xff]  ;;  %v1118_v12 = vld [vmem:[#allocation5 + $0x8] sm:$0xff]  ;;  %v1117_v14 = vld [vmem:[#allocation5] sm:$0xff]  ;;  %s886_s22 = sshll.u32 %s883_s21, 4  ;;  %s887_s22 = int_to_ptr.hbm [resolvable:$true] %s886_s22 }
  0x34   : > { %398 = vmatpush.bf16.msra.mxu0 %v1123_v2  ;;  %1177 = vmatpush.bf16.msra.mxu2 %v1123_v2  ;;  %v1126_v13 = vld [vmem:[#allocation5 + $0x48] sm:$0xff]  ;;  %v1125_v15 = vld [vmem:[#allocation5 + $0x40] sm:$0xff]  ;;  %s1453_s25 = sshra.s32 %s887_s22, 4  ;;  %s1454_s25 = int_to_ptr.hbm [resolvable:$true] %s1453_s25 }
  0x35   : > { %442 = vmatpush.bf16.msra.mxu1 %v1131_v3  ;;  %1185 = vmatpush.bf16.msra.mxu3 %v1131_v3  ;;  %v980_v16 = vld [vmem:[%s1631_s17] sm:$0xf]  ;;  %v1104_v17 = vld [vmem:[%s1631_s17 + $0x4] sm:$0xf0]  ;;  %v1004_v18 = vld [vmem:[%s1631_s17 + $0x30] sm:$0xf]  ;;  %p1460_p7 = scmp.lt.s32.totalorder %s1454_s25, %s1909_s2 }
  0x36   : > { %v1110_v19 = vld [vmem:[%s1631_s17 + $0x34] sm:$0xf0]  ;;  %v1103_v20 = vld [vmem:[%s1631_s17 + $0x4] sm:$0xf]  ;;  %v982_v21 = vld [vmem:[%s1631_s17 + $0x8] sm:$0xf0]  ;;  %v981_v24 = vor.u32 %v1104_v17, %v980_v16 }
  0x37   : > { %v1111_v22 = vld [vmem:[%s1631_s17 + $0x44] sm:$0xf]  ;;  %v1014_v23 = vld [vmem:[%s1631_s17 + $0x48] sm:$0xf0]  ;;  %v1005_v25 = vor.u32 %v1110_v19, %v1004_v18  ;;  %v985_v26 = vor.u32 %v1103_v20, %v982_v21  ;;  %v988_v28 = vld [vmem:[%s1631_s17 + $0x10] sm:$0xf] }
  0x38   : > { %399 = vmatpush.bf16.msra.mxu0 %v1122_v4  ;;  %1178 = vmatpush.bf16.msra.mxu2 %v1122_v4  ;;  %v1017_v27 = vor.u32 %v1111_v22, %v1014_v23  ;;  %v1106_v29 = vld [vmem:[%s1631_s17 + $0x14] sm:$0xf0]  ;;  %v1012_v30 = vld [vmem:[%s1631_s17 + $0x40] sm:$0xf]  ;;  %v1112_v31 = vld [vmem:[%s1631_s17 + $0x44] sm:$0xf0] }
  0x39   : > { %443 = vmatpush.bf16.msra.mxu1 %v1130_v5  ;;  %1186 = vmatpush.bf16.msra.mxu3 %v1130_v5  ;;  %v1105_v32 = vld [vmem:[%s1631_s17 + $0x14] sm:$0xf]  ;;  %v990_v33 = vld [vmem:[%s1631_s17 + $0x18] sm:$0xf0]  ;;  %v989_v36 = vor.u32 %v1106_v29, %v988_v28  ;;  %v1013_v37 = vor.u32 %v1112_v31, %v1012_v30  ;;  %v996_v40 = vld [vmem:[%s1631_s17 + $0x20] sm:$0xf] }
  0x3a   : > { %v1113_v34 = vld [vmem:[%s1631_s17 + $0x54] sm:$0xf]  ;;  %v1022_v35 = vld [vmem:[%s1631_s17 + $0x58] sm:$0xf0]  ;;  %v993_v38 = vor.u32 %v1105_v32, %v990_v33  ;;  %v1108_v41 = vld [vmem:[%s1631_s17 + $0x24] sm:$0xf0] }
  0x3b   : > { %v1025_v39 = vor.u32 %v1113_v34, %v1022_v35  ;;  %v1020_v42 = vld [vmem:[%s1631_s17 + $0x50] sm:$0xf]  ;;  %v1114_v43 = vld [vmem:[%s1631_s17 + $0x54] sm:$0xf0]  ;;  %v1107_v44 = vld [vmem:[%s1631_s17 + $0x24] sm:$0xf]  ;;  %v997_v48 = vor.u32 %v1108_v41, %v996_v40 }
  0x3c   : > { %400 = vmatpush.bf16.msra.mxu0 %v1121_v6  ;;  %1179 = vmatpush.bf16.msra.mxu2 %v1121_v6  ;;  %v998_v45 = vld [vmem:[%s1631_s17 + $0x28] sm:$0xf0]  ;;  %v1115_v46 = vld [vmem:[%s1631_s17 + $0x64] sm:$0xf]  ;;  %v1021_v49 = vor.u32 %v1114_v43, %v1020_v42  ;;  %v1028_v52 = vld [vmem:[%s1631_s17 + $0x60] sm:$0xf] }
  0x3d   : > { %444 = vmatpush.bf16.msra.mxu1 %v1129_v7  ;;  %1187 = vmatpush.bf16.msra.mxu3 %v1129_v7  ;;  %v1030_v47 = vld [vmem:[%s1631_s17 + $0x68] sm:$0xf0]  ;;  %v1001_v50 = vor.u32 %v1107_v44, %v998_v45  ;;  %v1116_v53 = vld [vmem:[%s1631_s17 + $0x64] sm:$0xf0]  ;;  %v1109_v54 = vld [vmem:[%s1631_s17 + $0x34] sm:$0xf] }
  0x3e   : > { %v1033_v51 = vor.u32 %v1115_v46, %v1030_v47  ;;  %v1006_v55 = vld [vmem:[%s1631_s17 + $0x38] sm:$0xf0]  ;;  %v1029_v56 = vor.u32 %v1116_v53, %v1028_v52  ;;  %s1455_s26 = scalar_lea.hbm %s1454_s25, 56 }
  0x3f   : > { %v1009_v57 = vor.u32 %v1109_v54, %v1006_v55  ;;  %p1456_p1 = scmp.ne.s32.totalorder %s1454_s25, %s1455_s26  ;;  %p1461_p2 = scmp.lt.s32.totalorder %s1459_s30, %s1455_s26 }
  0x40   : > { %401 = vmatpush.bf16.msra.mxu0 %v1120_v8  ;;  %1180 = vmatpush.bf16.msra.mxu2 %v1120_v8 }
  0x41   : > { %445 = vmatpush.bf16.msra.mxu1 %v1128_v9  ;;  %1188 = vmatpush.bf16.msra.mxu3 %v1128_v9  ;;  %p1457_p4 = pnand %p1456_p1, %p1601_p5  ;;  %p1462_p9 = por %p1461_p2, %p1460_p7 }
  0x43   : > { %p1458_p8 = pneg %p1457_p4 }
  0x44   : > { %402 = vmatpush.bf16.msra.mxu0 %v1119_v10  ;;  %1181 = vmatpush.bf16.msra.mxu2 %v1119_v10 }
  0x45   : > { %446 = vmatpush.bf16.msra.mxu1 %v1127_v11  ;;  %1189 = vmatpush.bf16.msra.mxu3 %v1127_v11  ;;  %p1463_p10 = pnand %p1462_p9, %p1458_p8 }
  0x48   : > { %403 = vmatpush.bf16.msra.mxu0 %v1118_v12  ;;  %1182 = vmatpush.bf16.msra.mxu2 %v1118_v12 }
  0x49   : > { %447 = vmatpush.bf16.msra.mxu1 %v1126_v13  ;;  %1190 = vmatpush.bf16.msra.mxu3 %v1126_v13 }
  0x4c   : > { %404 = vmatpush.bf16.msra.mxu0 %v1117_v14  ;;  %1183 = vmatpush.bf16.msra.mxu2 %v1117_v14 }
  0x4d   : > { %448 = vmatpush.bf16.msra.mxu1 %v1125_v15  ;;  %1191 = vmatpush.bf16.msra.mxu3 %v1125_v15 }
  0x4f   : > { %405 = vmatmul.bf16.vlgmr.msra.gmra.mxu0 %v981_v24  ;;  %420 = vmatmul.bf16.vlgmr.msra.gmra.mxu2 %v1005_v25 }
  0x50   : > { %449 = vmatmul.bf16.vlgmr.msra.gmra.mxu1 %v985_v26  ;;  %469 = vmatmul.bf16.vlgmr.msra.gmra.mxu3 %v1017_v27 }
  0x5f   : > { %410 = vmatmul.bf16.gmra.mxu0 %v989_v36  ;;  %425 = vmatmul.bf16.gmra.mxu2 %v1013_v37 }
  0x60   : > { %454 = vmatmul.bf16.gmra.mxu1 %v993_v38  ;;  %474 = vmatmul.bf16.gmra.mxu3 %v1025_v39 }
  0x6f   : > { %415 = vmatmul.bf16.gmra.mxu0 %v997_v48  ;;  %430 = vmatmul.bf16.gmra.mxu2 %v1021_v49 }
  0x70   : > { %459 = vmatmul.bf16.gmra.mxu1 %v1001_v50  ;;  %479 = vmatmul.bf16.gmra.mxu3 %v1033_v51 }
  0x7f   : > { %435 = vmatmul.bf16.gmra.mxu2 %v1029_v56 }
  0x80   : > { %464 = vmatmul.bf16.gmra.mxu1 %v1009_v57 }
  0xcc   : > { %v406_v58 = vpop.f32.mrf.mxu0 }
  0xcd   : > { %v450_v59 = vpop.f32.mrf.mxu1 }
  0xce   : > { %v1669_v63 = vadd.f32 %v450_v59, %v406_v58 }
  0xd0   : > { %v513_v51 = vpack.c.bf16 %v1669_v63, %v1669_v63 }
  0xd2   : > { %v421_v60 = vpop.f32.mrf.mxu2 }
  0xd3   : > { %v470_v2 = vpop.f32.mrf.mxu3 }
  0xd4   : > { %v408_v61 = vpop.f32.mrf.mxu0 }
  0xd5   : > { %v452_v62 = vpop.f32.mrf.mxu1 }
  0xd6   : > { %v1671_v0 = vadd.f32 %v452_v62, %v408_v61  ;;  %v1722_v61 = vunpack.c.l.bf16 %v513_v51 }
  0xd8   : > { %v1260_v1 = vpack.i.bf16 %v1671_v0, %v1669_v63  ;;  %v514_v54 = vpack.c.bf16 %v1671_v0, %v1671_v0 }
  0xda   : > { %1261 = vrot.lane.b32.xlu0 %v1260_v1, %s1516_s15  ;;  %v423_v3 = vpop.f32.mrf.mxu2 }
  0xdb   : > { %v472_v7 = vpop.f32.mrf.mxu3 }
  0xdc   : > { %v411_v4 = vpop.f32.mrf.mxu0 }
  0xdd   : > { %v455_v5 = vpop.f32.mrf.mxu1 }
  0xde   : > { %v1676_v10 = vadd.f32 %v455_v5, %v411_v4 }
  0xe0   : > { %v515_v63 = vpack.c.bf16 %v1676_v10, %v1676_v10 }
  0xe2   : > { %v426_v6 = vpop.f32.mrf.mxu2 }
  0xe3   : > { %v1683_v14 = vadd.f32 %v470_v2, %v426_v6  ;;  %v475_v16 = vpop.f32.mrf.mxu3  ;;  %v1724_v2 = vunpack.c.l.bf16 %v514_v54 }
  0xe4   : > { %v413_v8 = vpop.f32.mrf.mxu0 }
  0xe5   : > { %v457_v9 = vpop.f32.mrf.mxu1  ;;  %v521_v6 = vpack.c.bf16 %v1683_v14, %v1683_v14 }
  0xe6   : > { %v1678_v11 = vadd.f32 %v457_v9, %v413_v8  ;;  %v559_v8 = vmax.f32 %v1724_v2, 0.0  ;;  %v1732_v9 = vunpack.c.l.bf16 %v515_v63 }
  0xe8   : > { %v1265_v12 = vpack.i.bf16 %v1678_v11, %v1676_v10 }
  0xea   : > { %1266 = vrot.lane.b32.xlu0 %v1265_v12, %s1516_s15  ;;  %v428_v13 = vpop.f32.mrf.mxu2  ;;  %v516_v12 = vpack.c.bf16 %v1678_v11, %v1678_v11 }
  0xeb   : > { %v1685_v15 = vadd.f32 %v472_v7, %v428_v13  ;;  %v477_v24 = vpop.f32.mrf.mxu3  ;;  %v558_v7 = vmax.f32 %v1722_v61, 0.0 }
  0xec   : > { %v416_v17 = vpop.f32.mrf.mxu0 }
  0xed   : > { %v460_v18 = vpop.f32.mrf.mxu1  ;;  %v1280_v19 = vpack.i.bf16 %v1685_v15, %v1683_v14  ;;  %v522_v10 = vpack.c.bf16 %v1685_v15, %v1685_v15 }
  0xee   : > { %v1690_v23 = vadd.f32 %v460_v18, %v416_v17  ;;  %v1738_v17 = vunpack.c.l.bf16 %v521_v6 }
  0xef   : > { %1281 = vrot.lane.b32.xlu2 %v1280_v19, %s1516_s15  ;;  %v1747_v11 = vunpack.c.l.bf16 %v522_v10 }
  0xf2   : > { %v431_v20 = vpop.f32.mrf.mxu2 }
  0xf3   : > { %v1697_v28 = vadd.f32 %v475_v16, %v431_v20  ;;  %v480_v32 = vpop.f32.mrf.mxu3  ;;  %v1740_v20 = vpack.c.bf16 %v558_v7, %v558_v7 }
  0xf4   : > { %v418_v21 = vpop.f32.mrf.mxu0 }
  0xf5   : > { %v462_v22 = vpop.f32.mrf.mxu1 }
  0xf6   : > { %v1692_v25 = vadd.f32 %v462_v22, %v418_v21  ;;  %v1742_v21 = vpack.c.bf16 %v559_v8, %v559_v8  ;;  %v560_v22 = vmax.f32 %v1732_v9, 0.0 }
  0xf8   : > { %v1270_v26 = vpack.i.bf16 %v1692_v25, %v1690_v23 }
  0xfa   : > { %1271 = vrot.lane.b32.xlu1 %v1270_v26, %s1516_s15  ;;  %v433_v27 = vpop.f32.mrf.mxu2  ;;  %v1745_v26 = vunpack.c.l.bf16 %v516_v12 }
  0xfb   : > { %v1699_v29 = vadd.f32 %v477_v24, %v433_v27  ;;  %v482_v38 = vpop.f32.mrf.mxu3 }
  0xfd   : > { %v1285_v30 = vpack.i.bf16 %v1699_v29, %v1697_v28  ;;  %v465_v31 = vpop.f32.mrf.mxu1 }
  0xfe   : > { %v1704_v35 = vadd.f32 %v465_v31, %v421_v60 }
  0xff   : > { %1286 = vrot.lane.b32.xlu2 %v1285_v30, %s1516_s15 }
 0x102   : > { %v436_v33 = vpop.f32.mrf.mxu2 }
 0x103   : > { %v1711_v40 = vadd.f32 %v480_v32, %v436_v33 }
 0x105   : > { %v467_v34 = vpop.f32.mrf.mxu1 }
 0x106   : > { %v1706_v36 = vadd.f32 %v467_v34, %v423_v3 }
 0x108   : > { %v1275_v37 = vpack.i.bf16 %v1706_v36, %v1704_v35 }
 0x10a   : > { %1276 = vrot.lane.b32.xlu1 %v1275_v37, %s1516_s15  ;;  %v438_v39 = vpop.f32.mrf.mxu2 }
 0x10b   : > { %v1713_v41 = vadd.f32 %v482_v38, %v438_v39  ;;  %v566_v39 = vmax.f32 %v1738_v17, 0.0 }
 0x10d   : > { %v1290_v42 = vpack.i.bf16 %v1713_v41, %v1711_v40 }
 0x10f   : > { %1291 = vrot.lane.b32.xlu0 %v1290_v42, %s1516_s15 }
 0x149   : > { %v1282_v43 = vpop.permute.xlu2 %1281 }
 0x14a   : > { %v1284_v44 = vunpack.i.h.bf16 %v1282_v43  ;;  %v1283_v45 = vunpack.i.l.bf16 %v1282_v43 }
 0x14c   : > { %v536_v46 = vpack.c.bf16 %v1284_v44, %v1284_v44  ;;  %v535_v47 = vpack.c.bf16 %v1283_v45, %v1283_v45  ;;  %v1262_v48 = vpop.permute.xlu0 %1261 }
 0x14d   : > { %v1264_v49 = vunpack.i.h.bf16 %v1262_v48  ;;  %v1263_v50 = vunpack.i.l.bf16 %v1262_v48 }
 0x14e   : > { %v595_v52 = vxor.u32 2147516416, %v536_v46  ;;  %v594_v53 = vxor.u32 2147516416, %v535_v47 }
 0x14f   : > { %v528_v55 = vpack.c.bf16 %v1264_v49, %v1264_v49  ;;  %v527_v56 = vpack.c.bf16 %v1263_v50, %v1263_v50  ;;  %v561_v49 = vmax.f32 %v1745_v26, 0.0 }
 0x150   : > { %v609_v57 = vunpack.c.l.bf16 %v595_v52  ;;  %v608_v58 = vunpack.c.l.bf16 %v594_v53  ;;  %v567_v53 = vmax.f32 %v1747_v11, 0.0 }
 0x151   : > { %v587_v59 = vxor.u32 2147516416, %v528_v55  ;;  %v586_v60 = vxor.u32 2147516416, %v527_v56 }
 0x152   : > { %v632_v62 = vmul.f32 1.442695, %v609_v57  ;;  %v630_v1 = vmul.f32 1.442695, %v608_v58 }
 0x153   : > { %v601_v3 = vunpack.c.l.bf16 %v587_v59  ;;  %v600_v4 = vunpack.c.l.bf16 %v586_v60 }
 0x154   : > { %1295 = vpow2.f32 %v632_v62 }
 0x155   : > { %1297 = vpow2.f32 %v630_v1  ;;  %v616_v0 = vmul.f32 1.442695, %v601_v3  ;;  %v614_v5 = vmul.f32 1.442695, %v600_v4 }
 0x157   : > { %1299 = vpow2.f32 %v616_v0 }
 0x158   : > { %1301 = vpow2.f32 %v614_v5 }
 0x159   : > { %v1287_v13 = vpop.permute.xlu2 %1286 }
 0x15a   : > { %v1296_v16 = vpop.eup %1295  ;;  %v1289_v18 = vunpack.i.h.bf16 %v1287_v13  ;;  %v1288_v14 = vunpack.i.l.bf16 %v1287_v13  ;;  %v541_v13 = vlaneseq }
 0x15b   : > { %v1298_v19 = vpop.eup %1297  ;;  %v651_v24 = vpack.c.bf16 %v1296_v16, %v1296_v16 }
 0x15c   : > { %v650_v15 = vpack.c.bf16 %v1298_v19, %v1298_v19  ;;  %v538_v27 = vpack.c.bf16 %v1289_v18, %v1289_v18  ;;  %v1267_v30 = vpop.permute.xlu0 %1266  ;;  %v537_v33 = vpack.c.bf16 %v1288_v14, %v1288_v14  ;;  %v523_v14 = vpack.c.bf16 %v1697_v28, %v1697_v28 }
 0x15d   : > { %v1300_v31 = vpop.eup %1299  ;;  %v665_v32 = vunpack.c.l.bf16 %v651_v24  ;;  %v1269_v34 = vunpack.i.h.bf16 %v1267_v30  ;;  %v1268_v37 = vunpack.i.l.bf16 %v1267_v30  ;;  %v1517_v19 = vmov 1065369472  }
 0x15e   : > { %v1302_v38 = vpop.eup %1301  ;;  %v664_v42 = vunpack.c.l.bf16 %v650_v15  ;;  %v643_v43 = vpack.c.bf16 %v1300_v31, %v1300_v31  ;;  %v597_v44 = vxor.u32 2147516416, %v538_v27  ;;  %v596_v56 = vxor.u32 2147516416, %v537_v33 }
 0x15f   : > { %v679_v45 = vadd.f32 1.0, %v665_v32  ;;  %v642_v46 = vpack.c.bf16 %v1302_v38, %v1302_v38  ;;  %v530_v47 = vpack.c.bf16 %v1269_v34, %v1269_v34  ;;  %v529_v48 = vpack.c.bf16 %v1268_v37, %v1268_v37 }
 0x160   : > { %v678_v50 = vadd.f32 1.0, %v664_v42  ;;  %v657_v51 = vunpack.c.l.bf16 %v643_v43  ;;  %v611_v52 = vunpack.c.l.bf16 %v597_v44  ;;  %v610_v7 = vunpack.c.l.bf16 %v596_v56 }
 0x161   : > { %v693_v54 = vpack.c.bf16 %v679_v45, %v679_v45  ;;  %v656_v55 = vunpack.c.l.bf16 %v642_v46  ;;  %v589_v60 = vxor.u32 2147516416, %v530_v47  ;;  %v588_v3 = vxor.u32 2147516416, %v529_v48 }
 0x162   : > { %v692_v57 = vpack.c.bf16 %v678_v50, %v678_v50  ;;  %v671_v58 = vadd.f32 1.0, %v657_v51  ;;  %v636_v59 = vmul.f32 1.442695, %v611_v52  ;;  %v1754_v24 = vunpack.c.h.bf16 %v1517_v19 }
 0x163   : > { %v763_v62 = vunpack.c.h.bf16 %v693_v54  ;;  %v764_v1 = vunpack.c.l.bf16 %v693_v54  ;;  %v670_v63 = vadd.f32 1.0, %v656_v55  ;;  %v603_v10 = vunpack.c.l.bf16 %v589_v60 }
 0x164   : > { %v756_v4 = vunpack.c.h.bf16 %v692_v57  ;;  %v757_v0 = vunpack.c.l.bf16 %v692_v57  ;;  %v685_v5 = vpack.c.bf16 %v671_v58, %v671_v58  ;;  %1303 = vpow2.f32 %v636_v59 }
 0x165   : > { %1305 = vrcp.f32 %v763_v62  ;;  %v684_v6 = vpack.c.bf16 %v670_v63, %v670_v63  ;;  %v602_v18 = vunpack.c.l.bf16 %v588_v3  ;;  %v1756_v27 = vpack.c.bf16 %v560_v22, %v560_v22 }
 0x166   : > { %1307 = vrcp.f32 %v764_v1  ;;  %v707_v8 = vunpack.c.h.bf16 %v685_v5  ;;  %v708_v12 = vunpack.c.l.bf16 %v685_v5  ;;  %v1758_v30 = vunpack.c.l.bf16 %v1517_v19 }
 0x167   : > { %1309 = vrcp.f32 %v756_v4  ;;  %v700_v16 = vunpack.c.h.bf16 %v684_v6  ;;  %v701_v15 = vunpack.c.l.bf16 %v684_v6  ;;  %v634_v31 = vmul.f32 1.442695, %v610_v7 }
 0x168   : > { %1311 = vrcp.f32 %v757_v0  ;;  %v1760_v33 = vpack.c.bf16 %v566_v39, %v566_v39  ;;  %v1762_v34 = vpack.c.bf16 %v561_v49, %v561_v49  ;;  %v620_v37 = vmul.f32 1.442695, %v603_v10 }
 0x169   : > { %1313 = vrcp.f32 %v707_v8  ;;  %v1764_v28 = vpack.c.bf16 %v567_v53, %v567_v53  ;;  %v618_v43 = vmul.f32 1.442695, %v602_v18  ;;  %v1766_v22 = vunpack.c.l.bf16 %v523_v14 }
 0x16a   : > { %v1304_v32 = vpop.eup %1303  ;;  %1315 = vrcp.f32 %v708_v12  ;;  %v542_v45 = vand.u32 127, %v541_v13  ;;  %v524_v52 = vpack.c.bf16 %v1699_v29, %v1699_v29 }
 0x16b   : > { %v1306_v38 = vpop.eup %1305  ;;  %1317 = vrcp.f32 %v700_v16  ;;  %v653_v42 = vpack.c.bf16 %v1304_v32, %v1304_v32 }
 0x16c   : > { %v1308_v44 = vpop.eup %1307  ;;  %v766_v46 = vmul.f32 %v1306_v38, %v1754_v24  ;;  %1319 = vrcp.f32 %v701_v15  ;;  %v1272_v47 = vpop.permute.xlu1 %1271  ;;  %vm543_vm0 = vcmp.lt.s32.totalorder %v542_v45, 2  ;;  %v1776_v6 = vunpack.c.l.bf16 %v524_v52 }
 0x16d   : > { %v1310_v39 = vpop.eup %1309  ;;  %v768_v48 = vmul.f32 %v1308_v44, %v1758_v30  ;;  %v667_v49 = vunpack.c.l.bf16 %v653_v42  ;;  %1321 = vpow2.f32 %v634_v31  ;;  %v1274_v50 = vunpack.i.h.bf16 %v1272_v47  ;;  %vm1783_vm1 = vmpackc.low %vm543_vm0, %vm543_vm0 }
 0x16e   : > { %v1312_v51 = vpop.eup %1311  ;;  %v759_v53 = vmul.f32 %v1310_v39, %v1754_v24  ;;  %1323 = vpow2.f32 %v620_v37  ;;  %v1273_v54 = vunpack.i.l.bf16 %v1272_v47 }
 0x16f   : > { %v1314_v55 = vpop.eup %1313  ;;  %v769_v56 = vpack.c.bf16 %v766_v46, %v768_v48  ;;  %v761_v57 = vmul.f32 %v1312_v51, %v1758_v30  ;;  %v681_v58 = vadd.f32 1.0, %v667_v49  ;;  %1325 = vpow2.f32 %v618_v43 }
 0x170   : > { %v1316_v59 = vpop.eup %1315  ;;  %v710_v60 = vmul.f32 %v1314_v55, %v1754_v24  ;;  %v532_v62 = vpack.c.bf16 %v1274_v50, %v1274_v50  ;;  %v531_v1 = vpack.c.bf16 %v1273_v54, %v1273_v54 }
 0x171   : > { %v1318_v63 = vpop.eup %1317  ;;  %v807_v3 = vunpack.c.l.bf16 %v769_v56  ;;  %v762_v4 = vpack.c.bf16 %v759_v53, %v761_v57  ;;  %v712_v29 = vmul.f32 %v1316_v59, %v1758_v30  ;;  %v695_v0 = vpack.c.bf16 %v681_v58, %v681_v58 }
 0x172   : > { %v1320_v5 = vpop.eup %1319  ;;  %v703_v7 = vmul.f32 %v1318_v63, %v1754_v24  ;;  %v591_v8 = vxor.u32 2147516416, %v532_v62  ;;  %v590_v12 = vxor.u32 2147516416, %v531_v1 }
 0x173   : > { %v1322_v10 = vpop.eup %1321  ;;  %v806_v13 = vunpack.c.l.bf16 %v762_v4  ;;  %v821_v16 = vmul.f32 %v807_v3, %v1747_v11  ;;  %v713_v18 = vpack.c.bf16 %v710_v60, %v712_v29  ;;  %v705_v14 = vmul.f32 %v1320_v5, %v1758_v30 }
 0x174   : > { %v1324_v19 = vpop.eup %1323  ;;  %v777_v31 = vunpack.c.h.bf16 %v695_v0  ;;  %v778_v32 = vunpack.c.l.bf16 %v695_v0  ;;  %v652_v37 = vpack.c.bf16 %v1322_v10, %v1322_v10  ;;  %v605_v38 = vunpack.c.l.bf16 %v591_v8 }
 0x175   : > { %v1326_v42 = vpop.eup %1325  ;;  %v820_v43 = vmul.f32 %v806_v13, %v1738_v17  ;;  %v835_v44 = vpack.c.bf16 %v821_v16, %v821_v16  ;;  %v799_v11 = vunpack.c.l.bf16 %v713_v18  ;;  %v706_v46 = vpack.c.bf16 %v703_v7, %v705_v14 }
 0x176   : > { %1327 = vrcp.f32 %v777_v31  ;;  %v666_v47 = vunpack.c.l.bf16 %v652_v37  ;;  %v645_v39 = vpack.c.bf16 %v1324_v19, %v1324_v19  ;;  %v644_v48 = vpack.c.bf16 %v1326_v42, %v1326_v42 }
 0x177   : > { %v834_v45 = vpack.c.bf16 %v820_v43, %v820_v43  ;;  %v852_v49 = vsel %vm1783_vm1, %v1764_v28, %v835_v44  ;;  %v813_v50 = vmul.f32 %v799_v11, %v1724_v2  ;;  %v798_v51 = vunpack.c.l.bf16 %v706_v46 }
 0x178   : > { %v1156_v52 = vunpack.c.l.bf16 %v852_v49  ;;  %1329 = vrcp.f32 %v778_v32  ;;  %v680_v53 = vadd.f32 1.0, %v666_v47  ;;  %v659_v17 = vunpack.c.l.bf16 %v645_v39 }
 0x179   : > { %v851_v54 = vsel %vm1783_vm1, %v1760_v33, %v834_v45  ;;  %v827_v55 = vpack.c.bf16 %v813_v50, %v813_v50  ;;  %v812_v56 = vmul.f32 %v798_v51, %v1722_v61  ;;  %v658_v57 = vunpack.c.l.bf16 %v644_v48 }
 0x17a   : > { %v1155_v58 = vunpack.c.l.bf16 %v851_v54  ;;  %v694_v59 = vpack.c.bf16 %v680_v53, %v680_v53  ;;  %v673_v60 = vadd.f32 1.0, %v659_v17  ;;  %v624_v62 = vmul.f32 1.442695, %v605_v38 }
 0x17b   : > { %v844_v2 = vsel %vm1783_vm1, %v1742_v21, %v827_v55  ;;  %v826_v28 = vpack.c.bf16 %v812_v56, %v812_v56  ;;  %v672_v1 = vadd.f32 1.0, %v658_v57  ;;  %v604_v63 = vunpack.c.l.bf16 %v590_v12 }
 0x17c   : > { %v1328_v3 = vpop.eup %1327  ;;  %v1157_v4 = vpack.c.bf16 %v1156_v52, %v1155_v58  ;;  %v1136_v29 = vunpack.c.l.bf16 %v844_v2  ;;  %v770_v33 = vunpack.c.h.bf16 %v694_v59  ;;  %v771_v0 = vunpack.c.l.bf16 %v694_v59  ;;  %v1277_v5 = vpop.permute.xlu1 %1276 }
 0x17d   : > { %v843_v61 = vsel %vm1783_vm1, %v1740_v20, %v826_v28  ;;  %v780_v7 = vmul.f32 %v1328_v3, %v1754_v24  ;;  %v687_v8 = vpack.c.bf16 %v673_v60, %v673_v60  ;;  %v686_v10 = vpack.c.bf16 %v672_v1, %v672_v1 }
 0x17e   : > { %v1330_v13 = vpop.eup %1329  ;;  %1173 = vst [vmem:[%s1806_s8 + $0x20] sm:$0xff] %v1157_v4   ;;  %v1135_v21 = vunpack.c.l.bf16 %v843_v61  ;;  %1331 = vrcp.f32 %v770_v33  ;;  %v622_v12 = vmul.f32 1.442695, %v604_v63  ;;  %v1279_v16 = vunpack.i.h.bf16 %v1277_v5 }
 0x17f   : > { %v782_v18 = vmul.f32 %v1330_v13, %v1758_v30  ;;  %1333 = vrcp.f32 %v771_v0  ;;  %v721_v14 = vunpack.c.h.bf16 %v687_v8  ;;  %v722_v20 = vunpack.c.l.bf16 %v687_v8 }
 0x180   : > { %v1137_v19 = vpack.c.bf16 %v1136_v29, %v1135_v21  ;;  %v714_v31 = vunpack.c.h.bf16 %v686_v10  ;;  %v715_v32 = vunpack.c.l.bf16 %v686_v10  ;;  %1335 = vpow2.f32 %v624_v62 }
 0x181   : > { %v783_v37 = vpack.c.bf16 %v780_v7, %v782_v18  ;;  %1337 = vrcp.f32 %v721_v14  ;;  %v534_v38 = vpack.c.bf16 %v1279_v16, %v1279_v16  ;;  %v1278_v42 = vunpack.i.l.bf16 %v1277_v5  ;;  %v1292_v43 = vpop.permute.xlu0 %1291 }
 0x182   : > { %v569_v44 = vmax.f32 %v1776_v6, 0.0  ;;  %1138 = vst [vmem:[%s1806_s8] sm:$0xff] %v1137_v19   ;;  %1339 = vrcp.f32 %v722_v20  ;;  %v1294_v11 = vunpack.i.h.bf16 %v1292_v43  ;;  %v1293_v46 = vunpack.i.l.bf16 %v1292_v43 }
 0x183   : > { %v809_v47 = vunpack.c.l.bf16 %v783_v37  ;;  %1341 = vrcp.f32 %v714_v31  ;;  %v593_v39 = vxor.u32 2147516416, %v534_v38  ;;  %v533_v48 = vpack.c.bf16 %v1278_v42, %v1278_v42 }
 0x184   : > { %v1332_v45 = vpop.eup %1331  ;;  %v568_v49 = vmax.f32 %v1766_v22, 0.0  ;;  %1343 = vrcp.f32 %v715_v32  ;;  %v540_v50 = vpack.c.bf16 %v1294_v11, %v1294_v11  ;;  %v539_v51 = vpack.c.bf16 %v1293_v46, %v1293_v46 }
 0x185   : > { %v1334_v52 = vpop.eup %1333  ;;  %v773_v53 = vmul.f32 %v1332_v45, %v1754_v24  ;;  %v823_v17 = vmul.f32 %v809_v47, %v1776_v6  ;;  %1345 = vpow2.f32 %v622_v12  ;;  %v607_v54 = vunpack.c.l.bf16 %v593_v39 }
 0x186   : > { %v1336_v55 = vpop.eup %1335  ;;  %v583_v56 = vpack.c.bf16 %v569_v44, %v569_v44  ;;  %v775_v57 = vmul.f32 %v1334_v52, %v1758_v30  ;;  %v592_v58 = vxor.u32 2147516416, %v533_v48  ;;  %v599_v59 = vxor.u32 2147516416, %v540_v50 }
 0x187   : > { %v1338_v60 = vpop.eup %1337  ;;  %v837_v62 = vpack.c.bf16 %v823_v17, %v823_v17  ;;  %v647_v2 = vpack.c.bf16 %v1336_v55, %v1336_v55  ;;  %v628_v28 = vmul.f32 1.442695, %v607_v54  ;;  %v598_v1 = vxor.u32 2147516416, %v539_v51 }
 0x188   : > { %v1340_v63 = vpop.eup %1339  ;;  %v776_v3 = vpack.c.bf16 %v773_v53, %v775_v57  ;;  %v724_v4 = vmul.f32 %v1338_v60, %v1754_v24  ;;  %v606_v29 = vunpack.c.l.bf16 %v592_v58  ;;  %v613_v33 = vunpack.c.l.bf16 %v599_v59 }
 0x189   : > { %v1342_v6 = vpop.eup %1341  ;;  %v582_v0 = vpack.c.bf16 %v568_v49, %v568_v49  ;;  %v726_v5 = vmul.f32 %v1340_v63, %v1758_v30  ;;  %v661_v61 = vunpack.c.l.bf16 %v647_v2  ;;  %1347 = vpow2.f32 %v628_v28 }
 0x18a   : > { %v1344_v7 = vpop.eup %1343  ;;  %v808_v8 = vunpack.c.l.bf16 %v776_v3  ;;  %v854_v10 = vsel %vm1783_vm1, %v583_v56, %v837_v62  ;;  %v717_v13 = vmul.f32 %v1342_v6, %v1754_v24  ;;  %v626_v21 = vmul.f32 1.442695, %v606_v29 }
 0x18b   : > { %v1346_v12 = vpop.eup %1345  ;;  %v727_v16 = vpack.c.bf16 %v724_v4, %v726_v5  ;;  %v719_v18 = vmul.f32 %v1344_v7, %v1758_v30  ;;  %v675_v14 = vadd.f32 1.0, %v661_v61  ;;  %v640_v20 = vmul.f32 1.442695, %v613_v33 }
 0x18c   : > { %v822_v19 = vmul.f32 %v808_v8, %v1766_v22  ;;  %v646_v31 = vpack.c.bf16 %v1346_v12, %v1346_v12  ;;  %1349 = vpow2.f32 %v626_v21  ;;  %v612_v32 = vunpack.c.l.bf16 %v598_v1 }
 0x18d   : > { %v801_v37 = vunpack.c.l.bf16 %v727_v16  ;;  %v720_v38 = vpack.c.bf16 %v717_v13, %v719_v18  ;;  %v689_v42 = vpack.c.bf16 %v675_v14, %v675_v14  ;;  %1351 = vpow2.f32 %v640_v20 }
 0x18e   : > { %v836_v43 = vpack.c.bf16 %v822_v19, %v822_v19  ;;  %v1161_v44 = vunpack.c.l.bf16 %v854_v10  ;;  %v660_v11 = vunpack.c.l.bf16 %v646_v31  ;;  %v638_v46 = vmul.f32 1.442695, %v612_v32 }
 0x18f   : > { %v1348_v47 = vpop.eup %1347  ;;  %v815_v39 = vmul.f32 %v801_v37, %v1745_v26  ;;  %v800_v48 = vunpack.c.l.bf16 %v720_v38  ;;  %v735_v45 = vunpack.c.h.bf16 %v689_v42  ;;  %v736_v49 = vunpack.c.l.bf16 %v689_v42 }
 0x190   : > { %v853_v22 = vsel %vm1783_vm1, %v582_v0, %v836_v43  ;;  %v674_v50 = vadd.f32 1.0, %v660_v11  ;;  %v649_v51 = vpack.c.bf16 %v1348_v47, %v1348_v47  ;;  %1353 = vpow2.f32 %v638_v46 }
 0x191   : > { %v1160_v52 = vunpack.c.l.bf16 %v853_v22  ;;  %v829_v53 = vpack.c.bf16 %v815_v39, %v815_v39  ;;  %v814_v17 = vmul.f32 %v800_v48, %v1732_v9  ;;  %1355 = vrcp.f32 %v735_v45 }
 0x192   : > { %v1350_v54 = vpop.eup %1349  ;;  %v518_v55 = vpack.c.bf16 %v1692_v25, %v1692_v25  ;;  %1357 = vrcp.f32 %v736_v49  ;;  %v688_v26 = vpack.c.bf16 %v674_v50, %v674_v50  ;;  %v663_v56 = vunpack.c.l.bf16 %v649_v51 }
 0x193   : > { %v1352_v57 = vpop.eup %1351  ;;  %v1162_v58 = vpack.c.bf16 %v1161_v44, %v1160_v52  ;;  %v846_v59 = vsel %vm1783_vm1, %v1762_v34, %v829_v53  ;;  %v828_v60 = vpack.c.bf16 %v814_v17, %v814_v17  ;;  %v648_v62 = vpack.c.bf16 %v1350_v54, %v1350_v54 }
 0x194   : > { %v1141_v2 = vunpack.c.l.bf16 %v846_v59  ;;  %v728_v28 = vunpack.c.h.bf16 %v688_v26  ;;  %v729_v9 = vunpack.c.l.bf16 %v688_v26  ;;  %v677_v1 = vadd.f32 1.0, %v663_v56 }
 0x195   : > { %v517_v63 = vpack.c.bf16 %v1690_v23, %v1690_v23  ;;  %1174 = vst [vmem:[%s1806_s8 + $0x28] sm:$0xff] %v1162_v58   ;;  %v845_v25 = vsel %vm1783_vm1, %v1756_v27, %v828_v60  ;;  %v662_v3 = vunpack.c.l.bf16 %v648_v62  ;;  %v655_v4 = vpack.c.bf16 %v1352_v57, %v1352_v57 }
 0x196   : > { %v1354_v29 = vpop.eup %1353  ;;  %v549_v33 = vunpack.c.l.bf16 %v518_v55  ;;  %v1140_v6 = vunpack.c.l.bf16 %v845_v25  ;;  %1359 = vrcp.f32 %v728_v28  ;;  %v691_v34 = vpack.c.bf16 %v677_v1, %v677_v1 }
 0x197   : > { %v1356_v0 = vpop.eup %1355  ;;  %1361 = vrcp.f32 %v729_v9  ;;  %v676_v5 = vadd.f32 1.0, %v662_v3  ;;  %v669_v61 = vunpack.c.l.bf16 %v655_v4  ;;  %v654_v7 = vpack.c.bf16 %v1354_v29, %v1354_v29 }
 0x198   : > { %v1358_v8 = vpop.eup %1357  ;;  %v1142_v23 = vpack.c.bf16 %v1141_v2, %v1140_v6  ;;  %v738_v10 = vmul.f32 %v1356_v0, %v1754_v24  ;;  %v749_v13 = vunpack.c.h.bf16 %v691_v34  ;;  %v750_v21 = vunpack.c.l.bf16 %v691_v34 }
 0x199   : > { %v740_v27 = vmul.f32 %v1358_v8, %v1758_v30  ;;  %v690_v12 = vpack.c.bf16 %v676_v5, %v676_v5  ;;  %v683_v16 = vadd.f32 1.0, %v669_v61  ;;  %v668_v18 = vunpack.c.l.bf16 %v654_v7 }
 0x19a   : > { %v548_v14 = vunpack.c.l.bf16 %v517_v63  ;;  %1170 = vst [vmem:[%s1806_s8 + $0x8] sm:$0xff] %v1142_v23   ;;  %1363 = vrcp.f32 %v749_v13  ;;  %v563_v37 = vmax.f32 %v549_v33, 0.0  ;;  %v520_v44 = vpack.c.bf16 %v1706_v36, %v1706_v36 }
 0x19b   : > { %v741_v20 = vpack.c.bf16 %v738_v10, %v740_v27  ;;  %1365 = vrcp.f32 %v750_v21  ;;  %v742_v19 = vunpack.c.h.bf16 %v690_v12  ;;  %v743_v31 = vunpack.c.l.bf16 %v690_v12 }
 0x19c   : > { %v1360_v32 = vpop.eup %1359  ;;  %v697_v38 = vpack.c.bf16 %v683_v16, %v683_v16  ;;  %v682_v42 = vadd.f32 1.0, %v668_v18  ;;  %v562_v45 = vmax.f32 %v548_v14, 0.0  ;;  %v577_v51 = vpack.c.bf16 %v563_v37, %v563_v37 }
 0x19d   : > { %v1362_v43 = vpop.eup %1361  ;;  %v803_v11 = vunpack.c.l.bf16 %v741_v20  ;;  %v731_v46 = vmul.f32 %v1360_v32, %v1754_v24  ;;  %1367 = vrcp.f32 %v742_v19  ;;  %v519_v52 = vpack.c.bf16 %v1704_v35, %v1704_v35 }
 0x19e   : > { %v733_v47 = vmul.f32 %v1362_v43, %v1758_v30  ;;  %1369 = vrcp.f32 %v743_v31  ;;  %v791_v39 = vunpack.c.h.bf16 %v697_v38  ;;  %v792_v48 = vunpack.c.l.bf16 %v697_v38 }
 0x19f   : > { %v817_v49 = vmul.f32 %v803_v11, %v549_v33  ;;  %v696_v22 = vpack.c.bf16 %v682_v42, %v682_v42  ;;  %v551_v26 = vunpack.c.l.bf16 %v520_v44  ;;  %v526_v60 = vpack.c.bf16 %v1713_v41, %v1713_v41 }
 0x1a0   : > { %v1364_v50 = vpop.eup %1363  ;;  %v734_v53 = vpack.c.bf16 %v731_v46, %v733_v47  ;;  %1371 = vrcp.f32 %v791_v39  ;;  %v550_v1 = vunpack.c.l.bf16 %v519_v52  ;;  %v576_v3 = vpack.c.bf16 %v562_v45, %v562_v45 }
 0x1a1   : > { %v1366_v36 = vpop.eup %1365  ;;  %v831_v17 = vpack.c.bf16 %v817_v49, %v817_v49  ;;  %v752_v54 = vmul.f32 %v1364_v50, %v1754_v24  ;;  %1373 = vrcp.f32 %v792_v48  ;;  %v784_v55 = vunpack.c.h.bf16 %v696_v22 }
 0x1a2   : > { %v802_v56 = vunpack.c.l.bf16 %v734_v53  ;;  %v754_v57 = vmul.f32 %v1366_v36, %v1758_v30  ;;  %v785_v58 = vunpack.c.l.bf16 %v696_v22  ;;  %v565_v4 = vmax.f32 %v551_v26, 0.0 }
 0x1a3   : > { %v1368_v59 = vpop.eup %1367  ;;  %1375 = vrcp.f32 %v784_v55  ;;  %v848_v35 = vsel %vm1783_vm1, %v577_v51, %v831_v17  ;;  %v525_v41 = vpack.c.bf16 %v1711_v40, %v1711_v40  ;;  %v557_v61 = vunpack.c.l.bf16 %v526_v60 }
 0x1a4   : > { %v1370_v62 = vpop.eup %1369  ;;  %v816_v2 = vmul.f32 %v802_v56, %v548_v14  ;;  %v755_v28 = vpack.c.bf16 %v752_v54, %v754_v57  ;;  %v745_v9 = vmul.f32 %v1368_v59, %v1754_v24  ;;  %1377 = vrcp.f32 %v785_v58 }
 0x1a5   : > { %v747_v63 = vmul.f32 %v1370_v62, %v1758_v30  ;;  %v1146_v34 = vunpack.c.l.bf16 %v848_v35  ;;  %v564_v13 = vmax.f32 %v550_v1, 0.0  ;;  %v579_v12 = vpack.c.bf16 %v565_v4, %v565_v4 }
 0x1a6   : > { %v1372_v25 = vpop.eup %1371  ;;  %v830_v29 = vpack.c.bf16 %v816_v2, %v816_v2  ;;  %v805_v33 = vunpack.c.l.bf16 %v755_v28  ;;  %v556_v20 = vunpack.c.l.bf16 %v525_v41  ;;  %v571_v32 = vmax.f32 %v557_v61, 0.0 }
 0x1a7   : > { %v1374_v6 = vpop.eup %1373  ;;  %v748_v0 = vpack.c.bf16 %v745_v9, %v747_v63  ;;  %v794_v5 = vmul.f32 %v1372_v25, %v1754_v24  ;;  %v578_v43 = vpack.c.bf16 %v564_v13, %v564_v13 }
 0x1a8   : > { %v847_v7 = vsel %vm1783_vm1, %v576_v3, %v830_v29  ;;  %v819_v8 = vmul.f32 %v805_v33, %v551_v26  ;;  %v796_v23 = vmul.f32 %v1374_v6, %v1758_v30  ;;  %v585_v48 = vpack.c.bf16 %v571_v32, %v571_v32 }
 0x1a9   : > { %v1376_v10 = vpop.eup %1375  ;;  %v1145_v21 = vunpack.c.l.bf16 %v847_v7  ;;  %v804_v27 = vunpack.c.l.bf16 %v748_v0 }
 0x1aa   : > { %v833_v16 = vpack.c.bf16 %v819_v8, %v819_v8  ;;  %v797_v18 = vpack.c.bf16 %v794_v5, %v796_v23  ;;  %v787_v40 = vmul.f32 %v1376_v10, %v1754_v24  ;;  %v1378_v14 = vpop.eup %1377  ;;  %v570_v24 = vmax.f32 %v556_v20, 0.0 }
 0x1ab   : > { %v1147_v19 = vpack.c.bf16 %v1146_v34, %v1145_v21  ;;  %v818_v31 = vmul.f32 %v804_v27, %v550_v1  ;;  %v789_v42 = vmul.f32 %v1378_v14, %v1758_v30 }
 0x1ac   : > { %v850_v37 = vsel %vm1783_vm1, %v579_v12, %v833_v16  ;;  %v811_v38 = vunpack.c.l.bf16 %v797_v18  ;;  %v584_v52 = vpack.c.bf16 %v570_v24, %v570_v24 }
 0x1ad   : > { %1171 = vst [vmem:[%s1806_s8 + $0x10] sm:$0xff] %v1147_v19   ;;  %v832_v44 = vpack.c.bf16 %v818_v31, %v818_v31  ;;  %v1151_v11 = vunpack.c.l.bf16 %v850_v37  ;;  %v790_v47 = vpack.c.bf16 %v787_v40, %v789_v42 }
 0x1ae   : > { %v825_v46 = vmul.f32 %v811_v38, %v557_v61 }
 0x1af   : > { %v849_v39 = vsel %vm1783_vm1, %v578_v43, %v832_v44  ;;  %v810_v22 = vunpack.c.l.bf16 %v790_v47 }
 0x1b0   : > { %v1150_v45 = vunpack.c.l.bf16 %v849_v39  ;;  %v839_v49 = vpack.c.bf16 %v825_v46, %v825_v46 }
 0x1b1   : > { %v824_v51 = vmul.f32 %v810_v22, %v556_v20 }
 0x1b2   : > { %v1152_v50 = vpack.c.bf16 %v1151_v11, %v1150_v45  ;;  %v856_v30 = vsel %vm1783_vm1, %v585_v48, %v839_v49 }
 0x1b3   : > { %v838_v53 = vpack.c.bf16 %v824_v51, %v824_v51  ;;  %v1166_v36 = vunpack.c.l.bf16 %v856_v30 }
 0x1b4   : > { %1172 = vst [vmem:[%s1806_s8 + $0x18] sm:$0xff] %v1152_v50  }
 0x1b5   : > { %v855_v17 = vsel %vm1783_vm1, %v584_v52, %v838_v53 }
 0x1b6   : > { %v1165_v54 = vunpack.c.l.bf16 %v855_v17 }
 0x1b8   : > { %v1167_v55 = vpack.c.bf16 %v1166_v36, %v1165_v54 }
 0x1ba   : > { %1175 = vst [vmem:[%s1806_s8 + $0x30] sm:$0xff] %v1167_v55  }
 0x1bb   : > { %1466 = shalt.err (!%p1463_p10)
}
 0x1bc   : > { %s1518_s5 = smov 64   ;;  %s1519_s7 = smov 4  }
 0x1bd   : > { %1201 = dma.vmem_to_hbm [thread:$0]  (%p1601_p5), %s885_s13, 896, %s887_s22, %s872_s24, %s1518_s5, %s1518_s5, %s1519_s7  }
 0x1be PF: > { %p1218_p11 = scmp.ge.s32.totalorder %s1509_s12, 2  ;;  %s901_s17 = sand.u32 1, %s1497_s9  }
 0x1bf   : > { %s902_s15 = scalar_lea.sflag [#allocation4], %s901_s17 }
 0x1c0   : > { %p1212_p12 = pnand %p1218_p11, %p1570_p6 }
 0x1c2   : > { %p1213_p13 = pneg %p1212_p12 }
 0x1c4   : > { %1492 = dma.done.wait (%p1213_p13), %s902_s15, 896  }
 0x1c5   : > { %1494 = vsyncadd (%p1213_p13), %s902_s15, 4294966400  ;;  %p16_p0 = scmp.ge.s32.totalorder %s1587_s23, 10   ;;  %s1917_s9 = smov %s1501_s10 }
 0x1c6   : > { %s1918_s10 = smov %s1505_s11  ;;  %s1919_s11 = smov %s1597_s28 }
 0x1c7   : > { %s1920_s12 = smov %s1587_s23  ;;  %18 = sbr.rel (!%p16_p0) target bundleno = 6 (0x6), region = 77 }
 0x1cc   :  { %908 = vsyncpa [#allocation3], 1 }
 0x1cd   :  { %910 = vsyncpa [#allocation3 + $0x1], 1 }
 0x1ce   :  { %911 = vsyncpa [#allocation6], 1 }
 0x1cf   :  { %912 = vsyncpa [#allocation4], 1 }
 0x1d0   :  { %914 = vsyncpa [#allocation4 + $0x1], 1 }

</bundles_post_ra>
